<compile_context>
chip_gen: v7x
topology: tpu7x:2x2x1
jax: 0.10.0
libtpu: 0.0.40
codegen_flags: <defaults>
</compile_context>

<pallas_src>
import functools

import jax
import jax.numpy as jnp
from jax.experimental import pallas as pl
from jax.experimental.pallas import tpu as pltpu

D_IN, D_H1, D_H2, D_OUT = 28 * 28, 128, 64, 10
D_OUT_PAD = 16  # small zero-padded output width (contiguous 64 B/row f32 writeback)


def mlp_kernel(x_ref, w1_ref, b1_ref, w2_ref, b2_ref, w3_ref, b3_ref, o_ref):
    # Fused flatten-stream + f32->bf16 cast (no standalone XLA convert pass).
    x = x_ref[...].astype(jnp.bfloat16)
    # fc1 + ReLU: bf16 x bf16 MXU dot, f32 accumulate, bias/ReLU in f32.
    h1 = jnp.dot(x, w1_ref[...], preferred_element_type=jnp.float32)
    h1 = jnp.maximum(h1 + b1_ref[...], 0.0)
    # fc2 + ReLU: keep the native bf16 MXU path (no per-step f32 weight casts).
    h2 = jnp.dot(h1.astype(jnp.bfloat16), w2_ref[...],
                 preferred_element_type=jnp.float32)
    h2 = jnp.maximum(h2 + b2_ref[...], 0.0)
    # Output layer (zero-padded to D_OUT_PAD lanes, no activation).
    out = jnp.dot(h2.astype(jnp.bfloat16), w3_ref[...],
                  preferred_element_type=jnp.float32)
    o_ref[...] = (out + b3_ref[...]).astype(o_ref.dtype)


def _round_up(n, m):
    return ((n + m - 1) // m) * m


@functools.partial(jax.jit, static_argnames=("tile_b",))
def simple_nn_forward(x, packed_params, tile_b=2048):
    """x: (B, 1, 28, 28) or (B, 28, 28), any float dtype. Returns (B, 10) f32 logits."""
    w1, b1, w2, b2, w3p, b3p = packed_params
    B = x.shape[0]
    x_flat = x.reshape(B, D_IN)  # nn.Flatten (free reshape); dtype cast is in-kernel

    # Batch tile: multiple of 8 sublanes, capped by tile_b, and also capped to
    # ~B/2 so the grid has at least 2 steps (lights up both v7x TensorCores).
    tb = max(8, min(tile_b, _round_up(pl.cdiv(B, 2), 8)))
    grid = (pl.cdiv(B, tb),)  # ragged last block: OOB reads unused, OOB stores masked

    const = lambda i: (0, 0)  # weights/biases resident across the whole grid
    out_pad = pl.pallas_call(
        mlp_kernel,
        out_shape=jax.ShapeDtypeStruct((B, D_OUT_PAD), jnp.float32),
        grid_spec=pltpu.PrefetchScalarGridSpec(
            num_scalar_prefetch=0,
            grid=grid,
            in_specs=[
                pl.BlockSpec((tb, D_IN), lambda i: (i, 0)),      # streamed f32 input
                pl.BlockSpec((D_IN, D_H1), const),               # fc1 weight (bf16)
                pl.BlockSpec((1, D_H1), const),                  # fc1 bias (f32)
                pl.BlockSpec((D_H1, D_H2), const),               # fc2 weight (bf16)
                pl.BlockSpec((1, D_H2), const),                  # fc2 bias (f32)
                pl.BlockSpec((D_H2, D_OUT_PAD), const),          # out weight (padded bf16)
                pl.BlockSpec((1, D_OUT_PAD), const),             # out bias (padded f32)
            ],
            out_specs=pl.BlockSpec((tb, D_OUT_PAD), lambda i: (i, 0)),
        ),
        compiler_params=pltpu.CompilerParams(
            dimension_semantics=("parallel",),
            vmem_limit_bytes=32 * 1024 * 1024,
        ),
    )(x_flat, w1, b1, w2, b2, w3p, b3p)

    return out_pad[:, :D_OUT]


def init_params(key):
    """PyTorch nn.Linear default init U(-1/sqrt(fan_in), 1/sqrt(fan_in)).
    Raw params kept in f32; weights stored (in, out) (transpose of torch layout)."""
    dims = [(D_IN, D_H1), (D_H1, D_H2), (D_H2, D_OUT)]
    params = []
    for fan_in, fan_out in dims:
        key, kw, kb = jax.random.split(key, 3)
        bound = 1.0 / (fan_in ** 0.5)
        w = jax.random.uniform(kw, (fan_in, fan_out), jnp.float32, -bound, bound)
        b = jax.random.uniform(kb, (fan_out,), jnp.float32, -bound, bound)
        params += [w, b]
    return tuple(params)


def pack_params(raw_params):
    """One-time (outside the per-call path): cast weights to bf16, reshape biases
    to (1, out) f32, and zero-pad the output layer to D_OUT_PAD columns."""
    w1, b1, w2, b2, w3, b3 = raw_params
    w3p = jnp.zeros((D_H2, D_OUT_PAD), jnp.float32).at[:, :D_OUT].set(w3)
    b3p = jnp.zeros((D_OUT_PAD,), jnp.float32).at[:D_OUT].set(b3)
    return (
        w1.astype(jnp.bfloat16), b1.reshape(1, D_H1).astype(jnp.float32),
        w2.astype(jnp.bfloat16), b2.reshape(1, D_H2).astype(jnp.float32),
        w3p.astype(jnp.bfloat16), b3p.reshape(1, D_OUT_PAD).astype(jnp.float32),
    )


def reference_forward(x, raw_params):
    """Pure-JAX reference with the same quantization as the kernel (bf16 inputs,
    bf16 weights, bf16 h1/h2, f32 accumulation at HIGHEST precision)."""
    w1, b1, w2, b2, w3, b3 = raw_params
    hp = jax.lax.Precision.HIGHEST
    bq = lambda a: a.astype(jnp.bfloat16).astype(jnp.float32)
    B = x.shape[0]
    h = bq(x.reshape(B, D_IN))
    h = jnp.maximum(jnp.dot(h, bq(w1), precision=hp) + b1, 0.0)
    h = jnp.maximum(jnp.dot(bq(h), bq(w2), precision=hp) + b2, 0.0)
    return jnp.dot(bq(h), bq(w3), precision=hp) + b3


if __name__ == "__main__":
    key = jax.random.PRNGKey(0)
    k_x1, k_x2, k_p = jax.random.split(key, 3)

    raw = init_params(k_p)
    packed = pack_params(raw)  # padding/casts done once, outside the jitted forward

    # Test 1: small batch, single grid step (module-shaped input (B, 1, 28, 28)).
    B1 = 8
    x1 = jax.random.normal(k_x1, (B1, 1, 28, 28), jnp.float32)
    out1 = simple_nn_forward(x1, packed)
    jax.block_until_ready(out1)
    ref1 = reference_forward(x1, raw)
    assert out1.shape == (B1, D_OUT)
    assert jnp.allclose(out1, ref1, atol=5e-3, rtol=5e-3), \
        float(jnp.max(jnp.abs(out1 - ref1)))

    # Test 2: multi-tile streaming + ragged last block (B % tb != 0, 3 grid steps).
    B2 = 37
    x2 = jax.random.normal(k_x2, (B2, 1, 28, 28), jnp.float32)
    out2 = simple_nn_forward(x2, packed, tile_b=16)
    jax.block_until_ready(out2)
    ref2 = reference_forward(x2, raw)
    assert out2.shape == (B2, D_OUT)
    assert jnp.allclose(out2, ref2, atol=5e-3, rtol=5e-3), \
        float(jnp.max(jnp.abs(out2 - ref2)))

    print("KERNEL_OK")
</pallas_src>

<mosaic_0001>
module attributes {stable_mosaic.version = 11 : i64} {
  func.func @mlp_kernel(%arg0: i32, %arg1: memref<8x784xf32, #tpu.memory_space<vmem>>, %arg2: memref<784x128xbf16, #tpu.memory_space<vmem>>, %arg3: memref<1x128xf32, #tpu.memory_space<vmem>>, %arg4: memref<128x64xbf16, #tpu.memory_space<vmem>>, %arg5: memref<1x64xf32, #tpu.memory_space<vmem>>, %arg6: memref<64x16xbf16, #tpu.memory_space<vmem>>, %arg7: memref<1x16xf32, #tpu.memory_space<vmem>>, %arg8: memref<8x16xf32, #tpu.memory_space<vmem>>) attributes {dimension_semantics = [#tpu.dimension_semantics<parallel>], iteration_bounds = array<i64: 1>, scalar_prefetch = 0 : i64, scratch_operands = 0 : i64, tpu.core_type = #tpu.core_type<tc>, window_params = [{transform_indices = @transform_0, window_bounds = array<i64: 8, 784>}, {pipeline_mode = #tpu.pipeline_mode<synchronous>, transform_indices = @transform_1, window_bounds = array<i64: 784, 128>}, {pipeline_mode = #tpu.pipeline_mode<synchronous>, transform_indices = @transform_2, window_bounds = array<i64: 1, 128>}, {pipeline_mode = #tpu.pipeline_mode<synchronous>, transform_indices = @transform_3, window_bounds = array<i64: 128, 64>}, {pipeline_mode = #tpu.pipeline_mode<synchronous>, transform_indices = @transform_4, window_bounds = array<i64: 1, 64>}, {pipeline_mode = #tpu.pipeline_mode<synchronous>, transform_indices = @transform_5, window_bounds = array<i64: 64, 16>}, {pipeline_mode = #tpu.pipeline_mode<synchronous>, transform_indices = @transform_6, window_bounds = array<i64: 1, 16>}, {transform_indices = @transform_7, window_bounds = array<i64: 8, 16>}]} {
    %c0 = arith.constant 0 : index
    %c0_0 = arith.constant 0 : index
    %0 = vector.load %arg1[%c0, %c0_0] : memref<8x784xf32, #tpu.memory_space<vmem>>, vector<8x784xf32>
    %1 = arith.truncf %0 : vector<8x784xf32> to vector<8x784xbf16>
    %c0_1 = arith.constant 0 : index
    %c0_2 = arith.constant 0 : index
    %2 = vector.load %arg2[%c0_1, %c0_2] : memref<784x128xbf16, #tpu.memory_space<vmem>>, vector<784x128xbf16>
    %cst = arith.constant dense<0.000000e+00> : vector<8x128xf32>
    %3 = tpu.matmul %1, %2, %cst {dimension_numbers = #tpu.dot_dimension_numbers<[1], [0], [0], [1], [0, 0, 1, 1], [], []>} : vector<8x784xbf16>, vector<784x128xbf16>, vector<8x128xf32> -> vector<8x128xf32>
    %c0_3 = arith.constant 0 : index
    %c0_4 = arith.constant 0 : index
    %4 = vector.load %arg3[%c0_3, %c0_4] : memref<1x128xf32, #tpu.memory_space<vmem>>, vector<1x128xf32>
    %5 = vector.broadcast %4 : vector<1x128xf32> to vector<8x128xf32>
    %6 = arith.addf %3, %5 : vector<8x128xf32>
    %cst_5 = arith.constant 0.000000e+00 : f32
    %7 = vector.broadcast %cst_5 : f32 to vector<8x128xf32>
    %8 = arith.maximumf %6, %7 : vector<8x128xf32>
    %9 = arith.truncf %8 : vector<8x128xf32> to vector<8x128xbf16>
    %c0_6 = arith.constant 0 : index
    %c0_7 = arith.constant 0 : index
    %10 = vector.load %arg4[%c0_6, %c0_7] : memref<128x64xbf16, #tpu.memory_space<vmem>>, vector<128x64xbf16>
    %cst_8 = arith.constant dense<0.000000e+00> : vector<8x64xf32>
    %11 = tpu.matmul %9, %10, %cst_8 {dimension_numbers = #tpu.dot_dimension_numbers<[1], [0], [0], [1], [0, 0, 1, 1], [], []>} : vector<8x128xbf16>, vector<128x64xbf16>, vector<8x64xf32> -> vector<8x64xf32>
    %c0_9 = arith.constant 0 : index
    %c0_10 = arith.constant 0 : index
    %12 = vector.load %arg5[%c0_9, %c0_10] : memref<1x64xf32, #tpu.memory_space<vmem>>, vector<1x64xf32>
    %13 = vector.broadcast %12 : vector<1x64xf32> to vector<8x64xf32>
    %14 = arith.addf %11, %13 : vector<8x64xf32>
    %cst_11 = arith.constant 0.000000e+00 : f32
    %15 = vector.broadcast %cst_11 : f32 to vector<8x64xf32>
    %16 = arith.maximumf %14, %15 : vector<8x64xf32>
    %17 = arith.truncf %16 : vector<8x64xf32> to vector<8x64xbf16>
    %c0_12 = arith.constant 0 : index
    %c0_13 = arith.constant 0 : index
    %18 = vector.load %arg6[%c0_12, %c0_13] : memref<64x16xbf16, #tpu.memory_space<vmem>>, vector<64x16xbf16>
    %cst_14 = arith.constant dense<0.000000e+00> : vector<8x16xf32>
    %19 = tpu.matmul %17, %18, %cst_14 {dimension_numbers = #tpu.dot_dimension_numbers<[1], [0], [0], [1], [0, 0, 1, 1], [], []>} : vector<8x64xbf16>, vector<64x16xbf16>, vector<8x16xf32> -> vector<8x16xf32>
    %c0_15 = arith.constant 0 : index
    %c0_16 = arith.constant 0 : index
    %20 = vector.load %arg7[%c0_15, %c0_16] : memref<1x16xf32, #tpu.memory_space<vmem>>, vector<1x16xf32>
    %21 = vector.broadcast %20 : vector<1x16xf32> to vector<8x16xf32>
    %22 = arith.addf %19, %21 : vector<8x16xf32>
    %c0_17 = arith.constant 0 : index
    %c0_18 = arith.constant 0 : index
    %23 = vector.load %arg8[%c0_17, %c0_18] : memref<8x16xf32, #tpu.memory_space<vmem>>, vector<8x16xf32>
    tpu.vector_store %arg8[%c0_17, %c0_18], %22 {strides = array<i32>} : memref<8x16xf32, #tpu.memory_space<vmem>>, vector<8x16xf32>,
    return
  }
  func.func @transform_0(%arg0: i32) -> (i32, i32) {
    %c0_i32 = arith.constant 0 : i32
    %c0_i32_0 = arith.constant 0 : i32
    return %arg0, %c0_i32 : i32, i32
  }
  func.func @transform_1(%arg0: i32) -> (i32, i32) {
    %c0_i32 = arith.constant 0 : i32
    %c0_i32_0 = arith.constant 0 : i32
    %c0_i32_1 = arith.constant 0 : i32
    return %c0_i32, %c0_i32_0 : i32, i32
  }
  func.func @transform_2(%arg0: i32) -> (i32, i32) {
    %c0_i32 = arith.constant 0 : i32
    %c0_i32_0 = arith.constant 0 : i32
    %c0_i32_1 = arith.constant 0 : i32
    return %c0_i32, %c0_i32_0 : i32, i32
  }
  func.func @transform_3(%arg0: i32) -> (i32, i32) {
    %c0_i32 = arith.constant 0 : i32
    %c0_i32_0 = arith.constant 0 : i32
    %c0_i32_1 = arith.constant 0 : i32
    return %c0_i32, %c0_i32_0 : i32, i32
  }
  func.func @transform_4(%arg0: i32) -> (i32, i32) {
    %c0_i32 = arith.constant 0 : i32
    %c0_i32_0 = arith.constant 0 : i32
    %c0_i32_1 = arith.constant 0 : i32
    return %c0_i32, %c0_i32_0 : i32, i32
  }
  func.func @transform_5(%arg0: i32) -> (i32, i32) {
    %c0_i32 = arith.constant 0 : i32
    %c0_i32_0 = arith.constant 0 : i32
    %c0_i32_1 = arith.constant 0 : i32
    return %c0_i32, %c0_i32_0 : i32, i32
  }
  func.func @transform_6(%arg0: i32) -> (i32, i32) {
    %c0_i32 = arith.constant 0 : i32
    %c0_i32_0 = arith.constant 0 : i32
    %c0_i32_1 = arith.constant 0 : i32
    return %c0_i32, %c0_i32_0 : i32, i32
  }
  func.func @transform_7(%arg0: i32) -> (i32, i32) {
    %c0_i32 = arith.constant 0 : i32
    %c0_i32_0 = arith.constant 0 : i32
    return %arg0, %c0_i32 : i32, i32
  }
}

</mosaic_0001>

<bundles_post_ra>
// kernel: simple_nn_forward.1
= control target key start
LH: loop header
LB: loop body
LE: loop exit
PB: predicated region body
PF: predicated region fallthrough
CT: control target
= control target key end

     0   :  { %v1092_v44 = vmov 0.0   ;;  %vm1093_vm0 = vmmov 0   ;;  %vm441_vm1 = vcmask 130048   ;;  %s1381_s0 = inlined_call_operand.vmem [shape: f32[8,784], index: 0, kind: input, shape index: {}]   ;;  %s1382_s1 = inlined_call_operand.vmem [shape: bf16[784,128], index: 1, kind: input, shape index: {}]   ;;  %s1383_s2 = inlined_call_operand.vmem [shape: f32[1,128], index: 2, kind: input, shape index: {}]   ;;  %s1384_s3 = inlined_call_operand.vmem [shape: bf16[128,64], index: 3, kind: input, shape index: {}]   ;;  %s1385_s4 = inlined_call_operand.vmem [shape: f32[1,64], index: 4, kind: input, shape index: {}]   ;;  %s1386_s5 = inlined_call_operand.vmem [shape: bf16[64,16], index: 5, kind: input, shape index: {}]   ;;  %s1387_s6 = inlined_call_operand.vmem [shape: f32[1,16], index: 6, kind: input, shape index: {}]   ;;  %s1388_s7 = inlined_call_operand.hbm [shape: f32[8,16], index: 7, kind: output, shape index: {}]  }
   0x1   :  { %v1007_v0 = vld [vmem:[%s1382_s1 + $0x40] sm:$0xff]   ;;  %v1011_v4 = vld [vmem:[%s1382_s1 + $0x48] sm:$0xff]   ;;  %v1015_v8 = vld [vmem:[%s1382_s1 + $0x50] sm:$0xff]  }
   0x2   :  { %v1008_v1 = vld [vmem:[%s1382_s1] sm:$0xff]   ;;  %884 = vmatprep.subr.bf16.mxu0 %v1007_v0  ;;  %v1012_v5 = vld [vmem:[%s1382_s1 + $0x8] sm:$0xff]   ;;  %v1016_v9 = vld [vmem:[%s1382_s1 + $0x10] sm:$0xff]  }
   0x3   :  { %v1009_v2 = vld [vmem:[%s1382_s1 + $0xc0] sm:$0xff]   ;;  %885 = vmatpush3.bf16.msra.mxu0 %v1008_v1  ;;  %v1013_v6 = vld [vmem:[%s1382_s1 + $0xc8] sm:$0xff]   ;;  %v1017_v10 = vld [vmem:[%s1382_s1 + $0xd0] sm:$0xff]  }
   0x4   :  { %v1010_v3 = vld [vmem:[%s1382_s1 + $0x80] sm:$0xff]   ;;  %906 = vmatprep.subr.bf16.mxu1 %v1009_v2  ;;  %886 = vmatprep.subr.bf16.mxu0 %v1011_v4  ;;  %v1014_v7 = vld [vmem:[%s1382_s1 + $0x88] sm:$0xff]   ;;  %v1018_v11 = vld [vmem:[%s1382_s1 + $0x90] sm:$0xff]  }
   0x5   :  { %907 = vmatpush3.bf16.msra.mxu1 %v1010_v3  ;;  %v1019_v12 = vld [vmem:[%s1382_s1 + $0x58] sm:$0xff]   ;;  %v1023_v16 = vld [vmem:[%s1382_s1 + $0x60] sm:$0xff]   ;;  %v1027_v20 = vld [vmem:[%s1382_s1 + $0x68] sm:$0xff]  }
   0x6   :  { %908 = vmatprep.subr.bf16.mxu1 %v1013_v6  ;;  %v1020_v13 = vld [vmem:[%s1382_s1 + $0x18] sm:$0xff]   ;;  %v1024_v17 = vld [vmem:[%s1382_s1 + $0x20] sm:$0xff]   ;;  %v1028_v21 = vld [vmem:[%s1382_s1 + $0x28] sm:$0xff]  }
   0x7   :  { %887 = vmatpush3.bf16.msra.mxu0 %v1012_v5  ;;  %v1021_v14 = vld [vmem:[%s1382_s1 + $0xd8] sm:$0xff]   ;;  %v1025_v18 = vld [vmem:[%s1382_s1 + $0xe0] sm:$0xff]   ;;  %v1029_v22 = vld [vmem:[%s1382_s1 + $0xe8] sm:$0xff]  }
   0x8   :  { %888 = vmatprep.subr.bf16.mxu0 %v1015_v8  ;;  %v1022_v15 = vld [vmem:[%s1382_s1 + $0x98] sm:$0xff]   ;;  %v1026_v19 = vld [vmem:[%s1382_s1 + $0xa0] sm:$0xff]   ;;  %v1030_v23 = vld [vmem:[%s1382_s1 + $0xa8] sm:$0xff]  }
   0x9   :  { %909 = vmatpush3.bf16.msra.mxu1 %v1014_v7  ;;  %v1031_v24 = vld [vmem:[%s1382_s1 + $0x70] sm:$0xff]   ;;  %v1035_v28 = vld [vmem:[%s1382_s1 + $0x78] sm:$0xff]   ;;  %v29_v31 = vld [vmem:[%s1381_s0 + $0x8] sm:$0xff] }
   0xa   :  { %910 = vmatprep.subr.bf16.mxu1 %v1017_v10  ;;  %v1032_v25 = vld [vmem:[%s1382_s1 + $0x30] sm:$0xff]   ;;  %v1036_v29 = vld [vmem:[%s1382_s1 + $0x38] sm:$0xff]   ;;  %v36_v32 = vpack.c.bf16 %v29_v31, %v29_v31  ;;  %v28_v34 = vld [vmem:[%s1381_s0] sm:$0xff] }
   0xb   :  { %889 = vmatpush3.bf16.msra.mxu0 %v1016_v9  ;;  %v1033_v26 = vld [vmem:[%s1382_s1 + $0xf0] sm:$0xff]   ;;  %v1037_v30 = vld [vmem:[%s1382_s1 + $0xf8] sm:$0xff]   ;;  %v35_v35 = vpack.c.bf16 %v28_v34, %v28_v34  ;;  %v1039_v36 = vld [vmem:[%s1382_s1 + $0x140] sm:$0xff]  }
   0xc   :  { %890 = vmatprep.subr.bf16.mxu0 %v1019_v12  ;;  %v1034_v27 = vld [vmem:[%s1382_s1 + $0xb0] sm:$0xff]   ;;  %v1038_v33 = vld [vmem:[%s1382_s1 + $0xb8] sm:$0xff]   ;;  %477 = vmatprep.mubr.bf16.mxu0 %v36_v32  ;;  %v1040_v39 = vld [vmem:[%s1382_s1 + $0x100] sm:$0xff]  }
   0xd   :  { %911 = vmatpush3.bf16.msra.mxu1 %v1018_v11  ;;  %v31_v37 = vld [vmem:[%s1381_s0 + $0x18] sm:$0xff]  ;;  %v30_v40 = vld [vmem:[%s1381_s0 + $0x10] sm:$0xff]  ;;  %v1041_v42 = vld [vmem:[%s1382_s1 + $0x148] sm:$0xff]  }
   0xe   :  { %912 = vmatprep.subr.bf16.mxu1 %v1021_v14  ;;  %v38_v38 = vpack.c.bf16 %v31_v37, %v31_v37  ;;  %v37_v41 = vpack.c.bf16 %v30_v40, %v30_v40  ;;  %v1042_v43 = vld [vmem:[%s1382_s1 + $0x108] sm:$0xff]   ;;  %v1043_v45 = vld [vmem:[%s1382_s1 + $0x150] sm:$0xff]   ;;  %v1045_v47 = vld [vmem:[%s1382_s1 + $0x158] sm:$0xff]  }
   0xf   :  { %891 = vmatpush3.bf16.msra.mxu0 %v1020_v13  ;;  %v1044_v46 = vld [vmem:[%s1382_s1 + $0x110] sm:$0xff]   ;;  %v1046_v48 = vld [vmem:[%s1382_s1 + $0x118] sm:$0xff]   ;;  %v1047_v49 = vld [vmem:[%s1382_s1 + $0x160] sm:$0xff]  }
  0x10   :  { %892 = vmatprep.subr.bf16.mxu0 %v1023_v16  ;;  %517 = vmatprep.mubr.bf16.mxu1 %v38_v38  ;;  %v1048_v50 = vld [vmem:[%s1382_s1 + $0x120] sm:$0xff]   ;;  %v1049_v51 = vld [vmem:[%s1382_s1 + $0x168] sm:$0xff]   ;;  %v1051_v55 = vld [vmem:[%s1382_s1 + $0x170] sm:$0xff]  }
  0x11   :  { %913 = vmatpush3.bf16.msra.mxu1 %v1022_v15  ;;  %v1050_v52 = vld [vmem:[%s1382_s1 + $0x128] sm:$0xff]   ;;  %v1055_v53 = vld [vmem:[%s1382_s1 + $0x180] sm:$0xff]   ;;  %v34_v57 = vld [vmem:[%s1381_s0 + $0x30] sm:$0xff] }
  0x12   :  { %914 = vmatprep.subr.bf16.mxu1 %v1025_v18  ;;  %v33_v54 = vld [vmem:[%s1381_s0 + $0x28] sm:$0xff]  ;;  %v41_v58 = vpack.c.bf16 %v34_v57, %v34_v57  ;;  %v1052_v59 = vld [vmem:[%s1382_s1 + $0x130] sm:$0xff]   ;;  %v1053_v60 = vld [vmem:[%s1382_s1 + $0x178] sm:$0xff]  }
  0x13   :  { %893 = vmatpush3.bf16.msra.mxu0 %v1024_v17  ;;  %v40_v56 = vpack.c.bf16 %v33_v54, %v33_v54 }
  0x14   :  { %894 = vmatprep.subr.bf16.mxu0 %v1027_v20 }
  0x15   :  { %915 = vmatpush3.bf16.msra.mxu1 %v1026_v19 }
  0x16   :  { %916 = vmatprep.subr.bf16.mxu1 %v1029_v22 }
  0x17   :  { %895 = vmatpush3.bf16.msra.mxu0 %v1028_v21 }
  0x18   :  { %896 = vmatprep.subr.bf16.mxu0 %v1031_v24 }
  0x19   :  { %917 = vmatpush3.bf16.msra.mxu1 %v1030_v23 }
  0x1a   :  { %918 = vmatprep.subr.bf16.mxu1 %v1033_v26 }
  0x1b   :  { %897 = vmatpush3.bf16.msra.mxu0 %v1032_v25 }
  0x1c   :  { %898 = vmatprep.subr.bf16.mxu0 %v1035_v28 }
  0x1d   :  { %919 = vmatpush3.bf16.msra.mxu1 %v1034_v27 }
  0x1e   :  { %920 = vmatprep.subr.bf16.mxu1 %v1037_v30 }
  0x1f   :  { %899 = vmatpush3.bf16.msra.mxu0 %v1036_v29 }
  0x20   :  { %928 = vmatprep.subr.bf16.mxu0 %v1039_v36 }
  0x21   :  { %921 = vmatpush3.bf16.msra.mxu1 %v1038_v33 }
  0x22   :  { %478 = vmatmul.mubr.bf16.vlgmr.msra.gmra.mrb[0].mxu0 %v35_v35  ;;  %966 = vmatprep.subr.bf16.mxu1 %v1092_v44 }
  0x23   :  { %929 = vmatpush3.bf16.msra.mxu0 %v1040_v39  ;;  %557 = vmatprep.mubr.bf16.mxu0 %v40_v56 }
  0x24   :  { %518 = vmatmul.mubr.bf16.vlgmr.msra.gmra.mrb[0].mxu1 %v37_v41  ;;  %930 = vmatprep.subr.bf16.mxu0 %v1041_v42 }
  0x25   :  { %968 = vmatprep.mubr.msk.bf16.mxu1 %vm1093_vm0, %v1092_v44  ;;  %967 = vmatpush3.bf16.msra.mxu1 %v1055_v53 }
  0x26   :  { %972 = vmatprep.subr.bf16.mxu1 %v1092_v44 }
  0x27   :  { %931 = vmatpush3.bf16.msra.mxu0 %v1042_v43 }
  0x28   :  { %932 = vmatprep.subr.bf16.mxu0 %v1043_v45 }
  0x2b   :  { %933 = vmatpush3.bf16.msra.mxu0 %v1044_v46 }
  0x2c   :  { %934 = vmatprep.subr.bf16.mxu0 %v1045_v47  ;;  %969 = vmatmul.mubr.msk.bf16.vlgmr.msra.gmra.mrb[4].mxu1 %vm441_vm1, %v41_v58 }
  0x2d   :  { %988 = vmatprep.mubr.msk.bf16.mxu1 %vm1093_vm0, %v1092_v44 }
  0x2f   :  { %935 = vmatpush3.bf16.msra.mxu0 %v1046_v48 }
  0x30   :  { %936 = vmatprep.subr.bf16.mxu0 %v1047_v49 }
  0x33   :  { %937 = vmatpush3.bf16.msra.mxu0 %v1048_v50 }
  0x34   :  { %938 = vmatprep.subr.bf16.mxu0 %v1049_v51 }
  0x37   :  { %939 = vmatpush3.bf16.msra.mxu0 %v1050_v52 }
  0x38   :  { %940 = vmatprep.subr.bf16.mxu0 %v1051_v55 }
  0x39   :  { %12 = vsyncpa [#allocation3], 0  ;;  %v1054_v61 = vld [vmem:[%s1382_s1 + $0x138] sm:$0xff]   ;;  %v32_v62 = vld [vmem:[%s1381_s0 + $0x20] sm:$0xff]  ;;  %vm759_vm2 = vcmask 523264   ;;  %s1094_s1 = smov [#allocation2]  }
  0x3a   :  { %v39_v63 = vpack.c.bf16 %v32_v62, %v32_v62  ;;  %v1056_v0 = vld [vmem:[%s1384_s3] sm:$0xff]   ;;  %v1057_v1 = vld [vmem:[%s1384_s3 + $0x8] sm:$0xff]   ;;  %v1058_v2 = vld [vmem:[%s1384_s3 + $0x10] sm:$0xff]  }
  0x3b   :  { %941 = vmatpush3.bf16.msra.mxu0 %v1052_v59  ;;  %973 = vmatpush3.bf16.msra.mxu1 %v1056_v0  ;;  %v1059_v3 = vld [vmem:[%s1384_s3 + $0x18] sm:$0xff]   ;;  %v1060_v4 = vld [vmem:[%s1384_s3 + $0x20] sm:$0xff]   ;;  %v1061_v5 = vld [vmem:[%s1384_s3 + $0x28] sm:$0xff]  }
  0x3c   :  { %942 = vmatprep.subr.bf16.mxu0 %v1053_v60  ;;  %974 = vmatprep.subr.bf16.mxu1 %v1092_v44  ;;  %v1062_v6 = vld [vmem:[%s1384_s3 + $0x30] sm:$0xff]   ;;  %v1063_v7 = vld [vmem:[%s1384_s3 + $0x38] sm:$0xff]   ;;  %v1064_v8 = vld [vmem:[%s1386_s5] sm:$0xff]  }
  0x3d   :  { %v1065_v9 = vld [vmem:[%s1386_s5 + $0x8] sm:$0xff]   ;;  %v818_v11 = vld [vmem:[%s1383_s2] ss:$0 sm:$0xff]  ;;  %v1066_v36 = vld [vmem:[%s1386_s5 + $0x10] sm:$0xff]  }
  0x3e   :  { %v1067_v37 = vld [vmem:[%s1386_s5 + $0x18] sm:$0xff]   ;;  %v869_v38 = vld [vmem:[%s1385_s4] ss:$0 sm:$0xff]  ;;  %s810_s5 = sshll.u32 %s1094_s1, 4  ;;  %s811_s5 = int_to_ptr.vmem [resolvable:$true] %s810_s5 }
  0x3f   :  { %943 = vmatpush3.bf16.msra.mxu0 %v1054_v61  ;;  %975 = vmatpush3.bf16.msra.mxu1 %v1057_v1  ;;  %s1068_s4 = scalar_lea.vmem %s811_s5, 128  ;;  %p1073_p1 = scmp.lt.s32.totalorder %s811_s5, %s811_s5 }
  0x40   :  { %992 = vmatprep.subr.bf16.mxu0 %v1092_v44  ;;  %976 = vmatprep.subr.bf16.mxu1 %v1092_v44  ;;  %p1069_p0 = scmp.ne.s32.totalorder %s811_s5, %s1068_s4  ;;  %p1074_p2 = scmp.lt.s32.totalorder %s1068_s4, %s1068_s4 }
  0x42   :  { %558 = vmatmul.mubr.bf16.vlgmr.msra.gmra.mrb[4].mxu0 %v39_v63  ;;  %p1075_p3 = por %p1074_p2, %p1073_p1 }
  0x43   :  { %1000 = vmatprep.mubr.msk.bf16.mxu0 %vm1093_vm0, %v1092_v44  ;;  %977 = vmatpush3.bf16.msra.mxu1 %v1058_v2 }
  0x44   :  { %978 = vmatprep.subr.bf16.mxu1 %v1092_v44  ;;  %993 = vmatpush3.bf16.msra.mxu0 %v1064_v8  ;;  %p1076_p4 = pnand %p1075_p3, %p1069_p0 }
  0x45   :  { %994 = vmatprep.subr.bf16.mxu0 %v1092_v44 }
  0x47   :  { %979 = vmatpush3.bf16.msra.mxu1 %v1059_v3 }
  0x48   :  { %980 = vmatprep.subr.bf16.mxu1 %v1092_v44  ;;  %995 = vmatpush3.bf16.msra.mxu0 %v1065_v9 }
  0x49   :  { %996 = vmatprep.subr.bf16.mxu0 %v1092_v44 }
  0x4b   :  { %981 = vmatpush3.bf16.msra.mxu1 %v1060_v4 }
  0x4c   :  { %982 = vmatprep.subr.bf16.mxu1 %v1092_v44  ;;  %997 = vmatpush3.bf16.msra.mxu0 %v1066_v36 }
  0x4d   :  { %998 = vmatprep.subr.bf16.mxu0 %v1092_v44 }
  0x4f   :  { %983 = vmatpush3.bf16.msra.mxu1 %v1061_v5 }
  0x50   :  { %984 = vmatprep.subr.bf16.mxu1 %v1092_v44  ;;  %999 = vmatpush3.bf16.msra.mxu0 %v1067_v37 }
  0x53   :  { %985 = vmatpush3.bf16.msra.mxu1 %v1062_v6 }
  0x54   :  { %986 = vmatprep.subr.bf16.mxu1 %v1092_v44  ;;  %v878_v44 = vld [vmem:[%s1387_s6] ss:$0 sm:$0xff] }
  0x57   :  { %987 = vmatpush3.bf16.msra.mxu1 %v1063_v7 }
  0xf5   :  { %v900_v10 = vpop.f32.mrb[0].mxu0 }
  0xf6   :  { %v901_v12 = vpop.f32.mrb[1].mxu0 }
  0xf7   :  { %v902_v13 = vadd.f32 %v901_v12, %v900_v10  ;;  %v903_v14 = vpop.f32.mrb[2].mxu0  ;;  %v922_v15 = vpop.f32.mrb[0].mxu1 }
  0xf8   :  { %v904_v16 = vpop.f32.mrb[3].mxu0  ;;  %v923_v18 = vpop.f32.mrb[1].mxu1 }
  0xf9   :  { %v480_v17 = vadd.f32 %v902_v13, %v818_v11  ;;  %v924_v19 = vadd.f32 %v923_v18, %v922_v15  ;;  %v925_v20 = vpop.f32.mrb[2].mxu1 }
  0xfa   :  { %v926_v21 = vpop.f32.mrb[3].mxu1 }
  0xfb   :  { %v520_v22 = vadd.f32 %v924_v19, %v480_v17 }
  0xff   :  { %v599_v23 = vpop.f32.mrb[4].mxu1 }
 0x100   :  { %v970_v24 = vpop.f32.mrb[5].mxu1 }
 0x101   :  { %v602_v25 = vpop.f32.mrb[6].mxu1 }
 0x102   :  { %v971_v26 = vpop.f32.mrb[7].mxu1 }
 0x115   :  { %v944_v27 = vpop.f32.mrb[4].mxu0 }
 0x116   :  { %v945_v28 = vpop.f32.mrb[5].mxu0 }
 0x117   :  { %v946_v29 = vadd.f32 %v945_v28, %v944_v27  ;;  %v947_v30 = vpop.f32.mrb[6].mxu0 }
 0x118   :  { %v948_v31 = vpop.f32.mrb[7].mxu0 }
 0x119   :  { %v560_v32 = vadd.f32 %v946_v29, %v520_v22 }
 0x11b   :  { %v600_v33 = vadd.f32 %v599_v23, %v560_v32 }
 0x11d   :  { %v605_v34 = vmax.f32 %v600_v33, 0.0 }
 0x11f   :  { %v606_v35 = vpack.c.bf16 %v605_v34, %v605_v34 }
 0x121   :  { %989 = vmatmul.mubr.bf16.vlgmr.msra.gmra.mrb[8].mxu1 %v606_v35 }
 0x1f4   :  { %v712_v39 = vpop.f32.mrb[8].mxu1 }
 0x1f5   :  { %v713_v40 = vadd.f32 %v869_v38, %v712_v39  ;;  %v990_v41 = vpop.f32.mrb[9].mxu1 }
 0x1f6   :  { %v715_v42 = vpop.f32.mrb[10].mxu1 }
 0x1f7   :  { %v718_v43 = vmax.f32 %v713_v40, 0.0  ;;  %v991_v45 = vpop.f32.mrb[11].mxu1 }
 0x1f9   :  { %v719_v46 = vpack.c.bf16 %v718_v43, %v718_v43 }
 0x1fb   :  { %1001 = vmatmul.mubr.msk.bf16.vlgmr.msra.gmra.mrb[8].mxu0 %vm759_vm2, %v719_v46 }
 0x2ce   :  { %v797_v47 = vpop.f32.mrb[8].mxu0 }
 0x2cf   :  { %v798_v48 = vadd.f32 %v878_v44, %v797_v47  ;;  %v1002_v49 = vpop.f32.mrb[9].mxu0 }
 0x2d0   :  { %v800_v50 = vpop.f32.mrb[10].mxu0 }
 0x2d1   :  { %803 = vst.msk [vmem:[#allocation2] sm:$0xff] %vm441_vm1, %v798_v48  ;;  %v1003_v51 = vpop.f32.mrb[11].mxu0 }
 0x2d2   :  { %1079 = shalt.err (!%p1076_p4)
}
 0x2d3   :  { %s1080_s6 = scalar_lea.hbm %s1388_s7, 128 }
 0x2d4   :  { %p1081_p5 = scmp.ne.s32.totalorder %s1388_s7, %s1080_s6  ;;  %p1084_p6 = scmp.lt.u32.totalorder %s1080_s6, %s1388_s7 }
 0x2d6   :  { %p1086_p7 = pnand %p1084_p6, %p1081_p5 }
 0x2d8   :  { %1089 = shalt.err (!%p1086_p7)
}
 0x2d9   :  { %813 = dma.vmem_to_hbm [thread:$0]  %s811_s5, 128, %s1388_s7, [#allocation3]  }
 0x2da   :  { %1090 = dma.done.wait [#allocation3], 128  }
 0x2db   :  { %1091 = vsyncadd [#allocation3], 4294967168 }
 0x2dc   :  { %817 = vsyncpa [#allocation3], 1 }

</bundles_post_ra>
